<compile_context>
chip_gen: v5e
topology: v5e:2x2
jax: 0.10.0
libtpu: 0.0.40
codegen_flags: <defaults>
</compile_context>

<pallas_src>
import functools

import jax
import jax.numpy as jnp
from jax.experimental import pallas as pl
from jax.experimental.pallas import tpu as pltpu

BN_EPS = 1e-5


def _round_up(x, m):
    return (x + m - 1) // m * m


def _global_branch_kernel(x_ref, gamma_ref, beta_ref, wt_ref, b_ref,
                          cls_ref, last_ref, acc_ref, *, inv_hw):
    k = pl.program_id(0)

    @pl.when(k == 0)
    def _():
        acc_ref[...] = jnp.zeros_like(acc_ref)

    # Accumulate the raw spatial sum. x tile is (N, tHW, C): reducing over the
    # sublane axis keeps C lane-dense and the hot loop is a pure VPU add over
    # the DMA'd tile (memory bound).
    acc_ref[...] += jnp.sum(x_ref[...].astype(jnp.float32), axis=1)

    @pl.when(k == pl.num_programs(0) - 1)
    def _():
        # GAP: scale the accumulated sum once. Zero spatial padding (if any)
        # does not change the sum; inv_hw uses the true H*W.
        feat = acc_ref[...] * inv_hw                              # (N, C)

        # BatchNorm2d, training mode: per-channel biased stats over the batch.
        mu = jnp.mean(feat, axis=0, keepdims=True)                # (1, C)
        var = jnp.mean((feat - mu) ** 2, axis=0, keepdims=True)
        inv_std = jax.lax.rsqrt(var + BN_EPS)
        last = (feat - mu) * inv_std * gamma_ref[...] + beta_ref[...]

        # Dropout with p=0 is identity.
        # TODO(synk): dropout > 0 (random masking) not implemented; default p=0.

        # Classifier on the pre-BN pooled feature: feat @ W.T + b.
        # W is passed pre-transposed and zero-padded to a lane-dense width.
        cls = jnp.dot(feat, wt_ref[...],
                      preferred_element_type=jnp.float32) + b_ref[...]

        cls_ref[...] = cls.astype(cls_ref.dtype)
        last_ref[...] = last.astype(last_ref.dtype)


def _choose_hw_tile(hw, max_tile):
    """Largest multiple-of-8 tile <= max_tile; prefer exact divisors of hw."""
    t = min(max_tile, _round_up(hw, 8))
    t = max(8, t - t % 8)
    d = t
    while d >= 8:
        if hw % d == 0:
            return d, hw
        d -= 8
    return t, _round_up(hw, t)


def global_branch_forward(x, gamma, beta, w, b, *, max_tile_hw=512):
    """x: (N, C, H, W) f32 -> (cls_score (N, num_class), last_feat (N, C))."""
    N, C, H, W = x.shape
    num_class = w.shape[0]
    HW = H * W

    # Spatial tile: keep the double-buffered x tile well inside the smallest
    # scoped-VMEM default (v5e: 16 MiB); tHW is a multiple of 8 (sublanes).
    c_lanes = _round_up(C, 128)              # lane-rounded footprint of a C row
    budget = 12 * 1024 * 1024                # x double-buffer budget (bytes)
    max_by_budget = budget // (2 * N * c_lanes * 4)
    max_by_budget = max(8, max_by_budget - max_by_budget % 8)
    t_hw, hw_pad = _choose_hw_tile(HW, min(max_tile_hw, max_by_budget))
    grid = (hw_pad // t_hw,)

    # Channel-last layout: (N, C, H, W) -> (N, HW, C); zero spatial padding (if
    # any) does not change the accumulated sum.
    x3 = jnp.transpose(x.reshape(N, C, HW), (0, 2, 1))
    if hw_pad != HW:
        x3 = jnp.pad(x3, ((0, 0), (0, hw_pad - HW), (0, 0)))

    # Lane-dense classifier output: pad num_class up to a multiple of 128.
    ncp = _round_up(num_class, 128)
    wt = jnp.pad(w.T.astype(jnp.float32), ((0, 0), (0, ncp - num_class)))
    b2 = jnp.pad(b.astype(jnp.float32), (0, ncp - num_class)).reshape(1, ncp)
    gamma2 = gamma.reshape(1, C)
    beta2 = beta.reshape(1, C)

    # VMEM estimate: double-buffered x tile + resident params/outputs + scratch,
    # with lane/sublane rounding and headroom; clamp for v7x's smaller VMEM.
    est = (2 * N * t_hw * c_lanes                       # x tile (double buffer)
           + 2 * (C * ncp + 2 * c_lanes + ncp)          # wt, gamma, beta, b
           + 2 * (N * ncp + N * c_lanes)                # cls, last (resident)
           + N * c_lanes) * 4 + (4 << 20)               # accumulator + headroom
    vmem_limit = int(min(max(est, 16 << 20), 60 << 20))

    kernel = functools.partial(_global_branch_kernel, inv_hw=1.0 / float(HW))

    cls_pad, last_feat = pl.pallas_call(
        kernel,
        out_shape=(
            jax.ShapeDtypeStruct((N, ncp), jnp.float32),
            jax.ShapeDtypeStruct((N, C), jnp.float32),
        ),
        grid_spec=pltpu.PrefetchScalarGridSpec(
            num_scalar_prefetch=0,
            grid=grid,
            in_specs=[
                pl.BlockSpec((N, t_hw, C), lambda k: (0, k, 0)),   # x tile
                pl.BlockSpec((1, C), lambda k: (0, 0)),            # gamma
                pl.BlockSpec((1, C), lambda k: (0, 0)),            # beta
                pl.BlockSpec((C, ncp), lambda k: (0, 0)),          # W^T (padded)
                pl.BlockSpec((1, ncp), lambda k: (0, 0)),          # bias (padded)
            ],
            out_specs=(
                pl.BlockSpec((N, ncp), lambda k: (0, 0)),          # cls (resident)
                pl.BlockSpec((N, C), lambda k: (0, 0)),            # last (resident)
            ),
            scratch_shapes=[pltpu.VMEM((N, C), jnp.float32)],      # pooled-sum acc
        ),
        compiler_params=pltpu.CompilerParams(
            dimension_semantics=("arbitrary",),
            vmem_limit_bytes=vmem_limit,
        ),
    )(x3, gamma2, beta2, wt, b2)

    return cls_pad[:, :num_class], last_feat


def _reference(x, gamma, beta, w, b):
    feat = jnp.mean(x, axis=(2, 3))
    mu = jnp.mean(feat, axis=0, keepdims=True)
    var = jnp.mean((feat - mu) ** 2, axis=0, keepdims=True)
    last = (feat - mu) / jnp.sqrt(var + BN_EPS) * gamma[None, :] + beta[None, :]
    cls = feat @ w.T + b[None, :]
    return cls, last


if __name__ == "__main__":
    # Small shapes consistent with the module: batch=2, in_planes=32,
    # spatial 16x16, num_class=16.
    N, C, H, W = 2, 32, 16, 16
    num_class = 16

    key = jax.random.PRNGKey(0)
    kx, kg, kb, kw, kbias = jax.random.split(key, 5)

    x = jax.random.normal(kx, (N, C, H, W), dtype=jnp.float32)
    gamma = 1.0 + 0.1 * jax.random.normal(kg, (C,), dtype=jnp.float32)
    beta = 0.1 * jax.random.normal(kb, (C,), dtype=jnp.float32)
    w = jax.random.normal(kw, (num_class, C), dtype=jnp.float32) / jnp.sqrt(C)
    b = 0.01 * jax.random.normal(kbias, (num_class,), dtype=jnp.float32)

    # max_tile_hw=128 -> HW=256 splits into a 2-step grid, exercising the
    # accumulator / pl.when init+finalize path (default 512 for real shapes).
    cls_score, last_feat = global_branch_forward(x, gamma, beta, w, b,
                                                 max_tile_hw=128)
    jax.block_until_ready((cls_score, last_feat))

    ref_cls, ref_last = _reference(x, gamma, beta, w, b)
    assert cls_score.shape == (N, num_class)
    assert last_feat.shape == (N, C)
    assert jnp.allclose(cls_score, ref_cls, atol=1e-4, rtol=1e-4)
    assert jnp.allclose(last_feat, ref_last, atol=1e-4, rtol=1e-4)

    print("KERNEL_OK")
</pallas_src>

<mosaic_0001>
module attributes {stable_mosaic.version = 11 : i64} {
  func.func @_global_branch_kernel(%arg0: i32, %arg1: memref<2x128x32xf32, #tpu.memory_space<vmem>>, %arg2: memref<1x32xf32, #tpu.memory_space<vmem>>, %arg3: memref<1x32xf32, #tpu.memory_space<vmem>>, %arg4: memref<32x128xf32, #tpu.memory_space<vmem>>, %arg5: memref<1x128xf32, #tpu.memory_space<vmem>>, %arg6: memref<2x128xf32, #tpu.memory_space<vmem>>, %arg7: memref<2x32xf32, #tpu.memory_space<vmem>>, %arg8: memref<2x32xf32, #tpu.memory_space<vmem>>) attributes {dimension_semantics = [#tpu.dimension_semantics<arbitrary>], iteration_bounds = array<i64: 2>, scalar_prefetch = 0 : i64, scratch_operands = 1 : i64, tpu.core_type = #tpu.core_type<tc>, window_params = [{transform_indices = @transform_0, window_bounds = array<i64: 2, 128, 32>}, {pipeline_mode = #tpu.pipeline_mode<synchronous>, transform_indices = @transform_1, window_bounds = array<i64: 1, 32>}, {pipeline_mode = #tpu.pipeline_mode<synchronous>, transform_indices = @transform_2, window_bounds = array<i64: 1, 32>}, {pipeline_mode = #tpu.pipeline_mode<synchronous>, transform_indices = @transform_3, window_bounds = array<i64: 32, 128>}, {pipeline_mode = #tpu.pipeline_mode<synchronous>, transform_indices = @transform_4, window_bounds = array<i64: 1, 128>}, {pipeline_mode = #tpu.pipeline_mode<synchronous>, transform_indices = @transform_5, window_bounds = array<i64: 2, 128>}, {pipeline_mode = #tpu.pipeline_mode<synchronous>, transform_indices = @transform_6, window_bounds = array<i64: 2, 32>}]} {
    %c0_i32 = arith.constant 0 : i32
    %0 = arith.cmpi eq, %arg0, %c0_i32 : i32
    %1 = arith.extui %0 : i1 to i32
    %c0_i32_0 = arith.constant 0 : i32
    %2 = arith.cmpi ne, %1, %c0_i32_0 : i32
    scf.if %2 {
      %cst_8 = arith.constant 0.000000e+00 : f32
      %11 = vector.broadcast %cst_8 : f32 to vector<2x32xf32>
      %c0_9 = arith.constant 0 : index
      %c0_10 = arith.constant 0 : index
      %12 = vector.load %arg8[%c0_9, %c0_10] : memref<2x32xf32, #tpu.memory_space<vmem>>, vector<2x32xf32>
      tpu.vector_store %arg8[%c0_9, %c0_10], %11 {strides = array<i32>} : memref<2x32xf32, #tpu.memory_space<vmem>>, vector<2x32xf32>,
    } else {
    }
    %c0 = arith.constant 0 : index
    %c0_1 = arith.constant 0 : index
    %3 = vector.load %arg8[%c0, %c0_1] : memref<2x32xf32, #tpu.memory_space<vmem>>, vector<2x32xf32>
    %c0_2 = arith.constant 0 : index
    %c0_3 = arith.constant 0 : index
    %c0_4 = arith.constant 0 : index
    %4 = vector.load %arg1[%c0_2, %c0_3, %c0_4] : memref<2x128x32xf32, #tpu.memory_space<vmem>>, vector<2x128x32xf32>
    %cst = arith.constant dense<0.000000e+00> : vector<2x32xf32>
    %5 = vector.multi_reduction <add>, %4, %cst [1] : vector<2x128x32xf32> to vector<2x32xf32>
    %6 = arith.addf %3, %5 : vector<2x32xf32>
    %c0_5 = arith.constant 0 : index
    %c0_6 = arith.constant 0 : index
    %7 = vector.load %arg8[%c0_5, %c0_6] : memref<2x32xf32, #tpu.memory_space<vmem>>, vector<2x32xf32>
    tpu.vector_store %arg8[%c0_5, %c0_6], %6 {strides = array<i32>} : memref<2x32xf32, #tpu.memory_space<vmem>>, vector<2x32xf32>,
    %c1_i32 = arith.constant 1 : i32
    %8 = arith.cmpi eq, %arg0, %c1_i32 : i32
    %9 = arith.extui %8 : i1 to i32
    %c0_i32_7 = arith.constant 0 : i32
    %10 = arith.cmpi ne, %9, %c0_i32_7 : i32
    scf.if %10 {
      %c0_8 = arith.constant 0 : index
      %c0_9 = arith.constant 0 : index
      %11 = vector.load %arg8[%c0_8, %c0_9] : memref<2x32xf32, #tpu.memory_space<vmem>>, vector<2x32xf32>
      %cst_10 = arith.constant 3.906250e-03 : f32
      %12 = vector.broadcast %cst_10 : f32 to vector<2x32xf32>
      %13 = arith.mulf %11, %12 : vector<2x32xf32>
      %cst_11 = arith.constant dense<0.000000e+00> : vector<32xf32>
      %14 = vector.multi_reduction <add>, %13, %cst_11 [0] : vector<2x32xf32> to vector<32xf32>
      %15 = vector.shape_cast %14 : vector<32xf32> to vector<1x32xf32>
      %cst_12 = arith.constant 2.000000e+00 : f32
      %16 = vector.broadcast %cst_12 : f32 to vector<1x32xf32>
      %17 = arith.divf %15, %16 : vector<1x32xf32>
      %18 = vector.broadcast %17 : vector<1x32xf32> to vector<2x32xf32>
      %19 = arith.subf %13, %18 : vector<2x32xf32>
      %20 = arith.mulf %19, %19 : vector<2x32xf32>
      %cst_13 = arith.constant dense<0.000000e+00> : vector<32xf32>
      %21 = vector.multi_reduction <add>, %20, %cst_13 [0] : vector<2x32xf32> to vector<32xf32>
      %22 = vector.shape_cast %21 : vector<32xf32> to vector<1x32xf32>
      %cst_14 = arith.constant 2.000000e+00 : f32
      %23 = vector.broadcast %cst_14 : f32 to vector<1x32xf32>
      %24 = arith.divf %22, %23 : vector<1x32xf32>
      %cst_15 = arith.constant 9.99999974E-6 : f32
      %25 = vector.broadcast %cst_15 : f32 to vector<1x32xf32>
      %26 = arith.addf %24, %25 : vector<1x32xf32>
      %27 = math.rsqrt %26 : vector<1x32xf32>
      %28 = vector.broadcast %17 : vector<1x32xf32> to vector<2x32xf32>
      %29 = arith.subf %13, %28 : vector<2x32xf32>
      %30 = vector.broadcast %27 : vector<1x32xf32> to vector<2x32xf32>
      %31 = arith.mulf %29, %30 : vector<2x32xf32>
      %c0_16 = arith.constant 0 : index
      %c0_17 = arith.constant 0 : index
      %32 = vector.load %arg2[%c0_16, %c0_17] : memref<1x32xf32, #tpu.memory_space<vmem>>, vector<1x32xf32>
      %33 = vector.broadcast %32 : vector<1x32xf32> to vector<2x32xf32>
      %34 = arith.mulf %31, %33 : vector<2x32xf32>
      %c0_18 = arith.constant 0 : index
      %c0_19 = arith.constant 0 : index
      %35 = vector.load %arg3[%c0_18, %c0_19] : memref<1x32xf32, #tpu.memory_space<vmem>>, vector<1x32xf32>
      %36 = vector.broadcast %35 : vector<1x32xf32> to vector<2x32xf32>
      %37 = arith.addf %34, %36 : vector<2x32xf32>
      %c0_20 = arith.constant 0 : index
      %c0_21 = arith.constant 0 : index
      %38 = vector.load %arg4[%c0_20, %c0_21] : memref<32x128xf32, #tpu.memory_space<vmem>>, vector<32x128xf32>
      %cst_22 = arith.constant dense<0.000000e+00> : vector<2x128xf32>
      %39 = tpu.matmul %13, %38, %cst_22 {dimension_numbers = #tpu.dot_dimension_numbers<[1], [0], [0], [1], [0, 0, 1, 1], [], []>} : vector<2x32xf32>, vector<32x128xf32>, vector<2x128xf32> -> vector<2x128xf32>
      %c0_23 = arith.constant 0 : index
      %c0_24 = arith.constant 0 : index
      %40 = vector.load %arg5[%c0_23, %c0_24] : memref<1x128xf32, #tpu.memory_space<vmem>>, vector<1x128xf32>
      %41 = vector.broadcast %40 : vector<1x128xf32> to vector<2x128xf32>
      %42 = arith.addf %39, %41 : vector<2x128xf32>
      %c0_25 = arith.constant 0 : index
      %c0_26 = arith.constant 0 : index
      %43 = vector.load %arg6[%c0_25, %c0_26] : memref<2x128xf32, #tpu.memory_space<vmem>>, vector<2x128xf32>
      tpu.vector_store %arg6[%c0_25, %c0_26], %42 {strides = array<i32>} : memref<2x128xf32, #tpu.memory_space<vmem>>, vector<2x128xf32>,
      %c0_27 = arith.constant 0 : index
      %c0_28 = arith.constant 0 : index
      %44 = vector.load %arg7[%c0_27, %c0_28] : memref<2x32xf32, #tpu.memory_space<vmem>>, vector<2x32xf32>
      tpu.vector_store %arg7[%c0_27, %c0_28], %37 {strides = array<i32>} : memref<2x32xf32, #tpu.memory_space<vmem>>, vector<2x32xf32>,
    } else {
    }
    return
  }
  func.func @transform_0(%arg0: i32) -> (i32, i32, i32) {
    %c0_i32 = arith.constant 0 : i32
    %c0_i32_0 = arith.constant 0 : i32
    %c0_i32_1 = arith.constant 0 : i32
    return %c0_i32, %arg0, %c0_i32_0 : i32, i32, i32
  }
  func.func @transform_1(%arg0: i32) -> (i32, i32) {
    %c0_i32 = arith.constant 0 : i32
    %c0_i32_0 = arith.constant 0 : i32
    %c0_i32_1 = arith.constant 0 : i32
    return %c0_i32, %c0_i32_0 : i32, i32
  }
  func.func @transform_2(%arg0: i32) -> (i32, i32) {
    %c0_i32 = arith.constant 0 : i32
    %c0_i32_0 = arith.constant 0 : i32
    %c0_i32_1 = arith.constant 0 : i32
    return %c0_i32, %c0_i32_0 : i32, i32
  }
  func.func @transform_3(%arg0: i32) -> (i32, i32) {
    %c0_i32 = arith.constant 0 : i32
    %c0_i32_0 = arith.constant 0 : i32
    %c0_i32_1 = arith.constant 0 : i32
    return %c0_i32, %c0_i32_0 : i32, i32
  }
  func.func @transform_4(%arg0: i32) -> (i32, i32) {
    %c0_i32 = arith.constant 0 : i32
    %c0_i32_0 = arith.constant 0 : i32
    %c0_i32_1 = arith.constant 0 : i32
    return %c0_i32, %c0_i32_0 : i32, i32
  }
  func.func @transform_5(%arg0: i32) -> (i32, i32) {
    %c0_i32 = arith.constant 0 : i32
    %c0_i32_0 = arith.constant 0 : i32
    %c0_i32_1 = arith.constant 0 : i32
    return %c0_i32, %c0_i32_0 : i32, i32
  }
  func.func @transform_6(%arg0: i32) -> (i32, i32) {
    %c0_i32 = arith.constant 0 : i32
    %c0_i32_0 = arith.constant 0 : i32
    %c0_i32_1 = arith.constant 0 : i32
    return %c0_i32, %c0_i32_0 : i32, i32
  }
}

</mosaic_0001>

<bundles_post_ra>
// kernel: tpu_custom_call.1
= control target key start
LH: loop header
LB: loop body
LE: loop exit
PB: predicated region body
PF: predicated region fallthrough
CT: control target
= control target key end

     0   :  { %12 = vsyncpa [#allocation5], 0  ;;  %s1106_s0 = inlined_call_operand.vmem [shape: f32[2,256,32], index: 0, kind: input, shape index: {}]   ;;  %s1107_s1 = inlined_call_operand.vmem [shape: f32[1,32], index: 1, kind: input, shape index: {}]   ;;  %s1108_s2 = inlined_call_operand.vmem [shape: f32[1,32], index: 2, kind: input, shape index: {}]   ;;  %s1109_s3 = inlined_call_operand.vmem [shape: f32[32,128], index: 3, kind: input, shape index: {}]   ;;  %s1110_s4 = inlined_call_operand.vmem [shape: f32[1,128], index: 4, kind: input, shape index: {}]   ;;  %s1111_s5 = inlined_call_operand.hbm [shape: f32[2,128], index: 5, kind: output, shape index: {0}]   ;;  %s1112_s6 = inlined_call_operand.hbm [shape: f32[2,32], index: 6, kind: output, shape index: {1}]  }
   0x1   :  { %13 = vsyncpa [#allocation7], 0  ;;  %s876_s21 = smov 0   ;;  %s878_s22 = smov 0  }
   0x2   :  { %s880_s23 = smov 0  }
   0x3 LB: > { %s892_s24 = sadd.s32 4294967295, %s835_s23   ;;  %s895_s25 = sadd.s32 1, %s835_s23   ;;  %s835_s23 = sphi %s880_s23, %s1115_s23   ;;  %s831_s22 = sphi %s878_s22, %s1114_s22   ;;  %s827_s21 = sphi %s876_s21, %s1113_s21  }
   0x4   : > { %s23_s26 = ssub.s32 %s835_s23, %s895_s25  ;;  %s26_s27 = sadd.s32 1, %s831_s22 }
   0x5   : > { %p24_p0 = scmp.eq.s32.totalorder %s23_s26, 0  ;;  %p33_p1 = scmp.ne.s32.totalorder %s831_s22, %s827_s21 }
   0x6   : > { %p34_p2 = scmp.eq.s32.totalorder %s835_s23, 0  ;;  %p686_p4 = scmp.ge.s32.totalorder %s835_s23, 2 }
   0x7   : > { %s904_s28 = scalar_select %p24_p0, %s831_s22, %s26_s27  }
   0x8   : > { %p35_p3 = por %p34_p2, %p33_p1  ;;  %197 = sbr.rel (%p686_p4) target bundleno = 49 (0x31), region = 32 }
   0xd   : > { %200 = sbr.rel (!%p35_p3) target bundleno = 49 (0x31), region = 36  ;;  %s202_s29 = sand.u32 (%p35_p3), 1, %s831_s22  }
   0xe   : > { %s701_s30 = sshll.u32 (%p35_p3), %s835_s23, 7  ;;  %s687_s7 = sshll.u32 (%p35_p3), %s202_s29, 8 }
   0xf   : > { %s912_s10 = scalar_lea.vmem (%p35_p3), %s1106_s0, %s701_s30  ;;  %s917_s11 = scalar_lea.vmem (%p35_p3), [#allocation3], %s687_s7 }
  0x10   : > { %v298_v0 = vld [vmem:[%s912_s10] sm:$0xff] (%p35_p3)  ;;  %v300_v1 = vld [vmem:[%s912_s10 + $0x8] sm:$0xff] (%p35_p3)  ;;  %v302_v2 = vld [vmem:[%s912_s10 + $0x10] sm:$0xff] (%p35_p3) }
  0x11   : > { %299 = vst [vmem:[%s917_s11] sm:$0xff] (%p35_p3), %v298_v0  ;;  %v304_v3 = vld [vmem:[%s912_s10 + $0x18] sm:$0xff] (%p35_p3)  ;;  %v306_v4 = vld [vmem:[%s912_s10 + $0x20] sm:$0xff] (%p35_p3)  ;;  %v308_v5 = vld [vmem:[%s912_s10 + $0x28] sm:$0xff] (%p35_p3) }
  0x12   : > { %301 = vst [vmem:[%s917_s11 + $0x8] sm:$0xff] %v300_v1  ;;  %v310_v6 = vld [vmem:[%s912_s10 + $0x30] sm:$0xff]  ;;  %v312_v7 = vld [vmem:[%s912_s10 + $0x38] sm:$0xff]  ;;  %v314_v8 = vld [vmem:[%s912_s10 + $0x40] sm:$0xff] }
  0x13   : > { %303 = vst [vmem:[%s917_s11 + $0x10] sm:$0xff] %v302_v2  ;;  %v316_v9 = vld [vmem:[%s912_s10 + $0x48] sm:$0xff]  ;;  %v318_v10 = vld [vmem:[%s912_s10 + $0x50] sm:$0xff]  ;;  %v320_v11 = vld [vmem:[%s912_s10 + $0x58] sm:$0xff] }
  0x14   : > { %305 = vst [vmem:[%s917_s11 + $0x18] sm:$0xff] %v304_v3  ;;  %v322_v12 = vld [vmem:[%s912_s10 + $0x60] sm:$0xff]  ;;  %v324_v13 = vld [vmem:[%s912_s10 + $0x68] sm:$0xff]  ;;  %v326_v14 = vld [vmem:[%s912_s10 + $0x70] sm:$0xff] }
  0x15   : > { %307 = vst [vmem:[%s917_s11 + $0x20] sm:$0xff] %v306_v4  ;;  %v328_v15 = vld [vmem:[%s912_s10 + $0x78] sm:$0xff]  ;;  %v330_v16 = vld [vmem:[%s912_s10 + $0x100] sm:$0xff]  ;;  %v332_v17 = vld [vmem:[%s912_s10 + $0x108] sm:$0xff] }
  0x16   : > { %309 = vst [vmem:[%s917_s11 + $0x28] sm:$0xff] %v308_v5  ;;  %v334_v18 = vld [vmem:[%s912_s10 + $0x110] sm:$0xff]  ;;  %v336_v19 = vld [vmem:[%s912_s10 + $0x118] sm:$0xff]  ;;  %v338_v20 = vld [vmem:[%s912_s10 + $0x120] sm:$0xff] }
  0x17   : > { %311 = vst [vmem:[%s917_s11 + $0x30] sm:$0xff] %v310_v6  ;;  %v340_v21 = vld [vmem:[%s912_s10 + $0x128] sm:$0xff]  ;;  %v342_v22 = vld [vmem:[%s912_s10 + $0x130] sm:$0xff]  ;;  %v344_v23 = vld [vmem:[%s912_s10 + $0x138] sm:$0xff] }
  0x18   : > { %313 = vst [vmem:[%s917_s11 + $0x38] sm:$0xff] %v312_v7  ;;  %v346_v24 = vld [vmem:[%s912_s10 + $0x140] sm:$0xff]  ;;  %v348_v25 = vld [vmem:[%s912_s10 + $0x148] sm:$0xff]  ;;  %v350_v26 = vld [vmem:[%s912_s10 + $0x150] sm:$0xff] }
  0x19   : > { %315 = vst [vmem:[%s917_s11 + $0x40] sm:$0xff] %v314_v8  ;;  %v352_v27 = vld [vmem:[%s912_s10 + $0x158] sm:$0xff]  ;;  %v354_v28 = vld [vmem:[%s912_s10 + $0x160] sm:$0xff]  ;;  %v356_v29 = vld [vmem:[%s912_s10 + $0x168] sm:$0xff] }
  0x1a   : > { %317 = vst [vmem:[%s917_s11 + $0x48] sm:$0xff] %v316_v9  ;;  %v358_v30 = vld [vmem:[%s912_s10 + $0x170] sm:$0xff]  ;;  %v360_v31 = vld [vmem:[%s912_s10 + $0x178] sm:$0xff] }
  0x1b   : > { %319 = vst [vmem:[%s917_s11 + $0x50] sm:$0xff] %v318_v10 }
  0x1c   : > { %321 = vst [vmem:[%s917_s11 + $0x58] sm:$0xff] %v320_v11 }
  0x1d   : > { %323 = vst [vmem:[%s917_s11 + $0x60] sm:$0xff] %v322_v12 }
  0x1e   : > { %325 = vst [vmem:[%s917_s11 + $0x68] sm:$0xff] %v324_v13 }
  0x1f   : > { %327 = vst [vmem:[%s917_s11 + $0x70] sm:$0xff] %v326_v14 }
  0x20   : > { %329 = vst [vmem:[%s917_s11 + $0x78] sm:$0xff] %v328_v15 }
  0x21   : > { %331 = vst [vmem:[%s917_s11 + $0x80] sm:$0xff] %v330_v16 }
  0x22   : > { %333 = vst [vmem:[%s917_s11 + $0x88] sm:$0xff] %v332_v17 }
  0x23   : > { %335 = vst [vmem:[%s917_s11 + $0x90] sm:$0xff] %v334_v18 }
  0x24   : > { %337 = vst [vmem:[%s917_s11 + $0x98] sm:$0xff] %v336_v19 }
  0x25   : > { %339 = vst [vmem:[%s917_s11 + $0xa0] sm:$0xff] %v338_v20 }
  0x26   : > { %341 = vst [vmem:[%s917_s11 + $0xa8] sm:$0xff] %v340_v21 }
  0x27   : > { %343 = vst [vmem:[%s917_s11 + $0xb0] sm:$0xff] %v342_v22 }
  0x28   : > { %345 = vst [vmem:[%s917_s11 + $0xb8] sm:$0xff] %v344_v23 }
  0x29   : > { %347 = vst [vmem:[%s917_s11 + $0xc0] sm:$0xff] %v346_v24 }
  0x2a   : > { %349 = vst [vmem:[%s917_s11 + $0xc8] sm:$0xff] %v348_v25 }
  0x2b   : > { %351 = vst [vmem:[%s917_s11 + $0xd0] sm:$0xff] %v350_v26 }
  0x2c   : > { %353 = vst [vmem:[%s917_s11 + $0xd8] sm:$0xff] %v352_v27 }
  0x2d   : > { %355 = vst [vmem:[%s917_s11 + $0xe0] sm:$0xff] %v354_v28 }
  0x2e   : > { %357 = vst [vmem:[%s917_s11 + $0xe8] sm:$0xff] %v356_v29 }
  0x2f   : > { %359 = vst [vmem:[%s917_s11 + $0xf0] sm:$0xff] %v358_v30 }
  0x30   : > { %361 = vst [vmem:[%s917_s11 + $0xf8] sm:$0xff] %v360_v31 }
  0x31 PF: > { %p690_p5 = scmp.ge.s32.totalorder %s835_s23, 1  ;;  %p366_p6 = scmp.lt.s32.totalorder %s835_s23, 3 }
  0x33   : > { %p367_p7 = pnand %p690_p5, %p366_p6 }
  0x34   : > { %s373_s12 = sand.u32 (!%p367_p7), 1, %s827_s21   ;;  %p692_p8 = scmp.ne.s32.totalorder (!%p367_p7), %s892_s24, 0 }
  0x35   : > { %370 = sbr.rel (%p367_p7) target bundleno = 263 (0x107), region = 74  ;;  %s691_s13 = sshll.u32 (!%p367_p7), %s373_s12, 8 }
  0x36   : > { %s983_s14 = scalar_lea.vmem (!%p367_p7), [#allocation3], %s691_s13 }
  0x3a   : > { %401 = sbr.rel (%p692_p8) target bundleno = 65 (0x41), region = 82 }
  0x3f   : > { %vm402_vm0 = vcmask 254976   ;;  %v837_v32 = vmov 0.0  }
  0x40   : > { %403 = vst.msk [vmem:[#allocation2] sm:$0x3] %vm402_vm0, %v837_v32 }
  0x41 PF: > { %v405_v33 = vld [vmem:[%s983_s14] sm:$0xff]  ;;  %v406_v34 = vld [vmem:[%s983_s14 + $0x8] sm:$0xff]  ;;  %vm437_vm1 = vcmask 261120   ;;  %v407_v35 = vld [vmem:[%s983_s14 + $0x10] sm:$0xff]  ;;  %vm514_vm2 = vcmask 1041409   ;;  %vm518_vm3 = vcmask 254976  }
  0x42   : > { %v408_v36 = vld [vmem:[%s983_s14 + $0x18] sm:$0xff]  ;;  %v438_v37 = vsel %vm437_vm1, %v405_v33, 0.0  ;;  %v439_v38 = vsel %vm437_vm1, %v406_v34, 0.0  ;;  %v409_v39 = vld [vmem:[%s983_s14 + $0x20] sm:$0xff]  ;;  %v441_v41 = vsel %vm437_vm1, %v407_v35, 0.0  ;;  %v410_v43 = vld [vmem:[%s983_s14 + $0x28] sm:$0xff] }
  0x43   : > { %v440_v40 = vadd.f32 %v439_v38, %v438_v37  ;;  %v443_v42 = vsel %vm437_vm1, %v408_v36, 0.0  ;;  %v411_v45 = vld [vmem:[%s983_s14 + $0x30] sm:$0xff]  ;;  %v421_v46 = vld [vmem:[%s983_s14 + $0x80] sm:$0xff]  ;;  %v445_v47 = vsel %vm437_vm1, %v409_v39, 0.0  ;;  %v422_v48 = vld [vmem:[%s983_s14 + $0x88] sm:$0xff]  ;;  %v447_v53 = vsel %vm437_vm1, %v410_v43, 0.0 }
  0x44   : > { %v423_v49 = vld [vmem:[%s983_s14 + $0x90] sm:$0xff]  ;;  %v424_v50 = vld [vmem:[%s983_s14 + $0x98] sm:$0xff]  ;;  %v475_v52 = vsel %vm437_vm1, %v421_v46, 0.0  ;;  %v476_v54 = vsel %vm437_vm1, %v422_v48, 0.0  ;;  %v425_v57 = vld [vmem:[%s983_s14 + $0xa0] sm:$0xff]  ;;  %v449_v60 = vsel %vm437_vm1, %v411_v45, 0.0 }
  0x45   : > { %v442_v44 = vadd.f32 %v441_v41, %v440_v40  ;;  %v478_v55 = vsel %vm437_vm1, %v423_v49, 0.0  ;;  %v412_v56 = vld [vmem:[%s983_s14 + $0x38] sm:$0xff]  ;;  %v477_v59 = vadd.f32 %v476_v54, %v475_v52  ;;  %v480_v61 = vsel %vm437_vm1, %v424_v50, 0.0  ;;  %v413_v62 = vld [vmem:[%s983_s14 + $0x40] sm:$0xff]  ;;  %v426_v63 = vld [vmem:[%s983_s14 + $0xa8] sm:$0xff]  ;;  %p693_p9 = scmp.ne.s32.totalorder %s892_s24, 1 }
  0x46   : > { %v451_v2 = vsel %vm437_vm1, %v412_v56, 0.0  ;;  %v482_v3 = vsel %vm437_vm1, %v425_v57, 0.0  ;;  %v414_v4 = vld [vmem:[%s983_s14 + $0x48] sm:$0xff]  ;;  %v427_v5 = vld [vmem:[%s983_s14 + $0xb0] sm:$0xff]  ;;  %v453_v8 = vsel %vm437_vm1, %v413_v62, 0.0  ;;  %v484_v9 = vsel %vm437_vm1, %v426_v63, 0.0 }
  0x47   : > { %v444_v51 = vadd.f32 %v443_v42, %v442_v44  ;;  %v479_v1 = vadd.f32 %v478_v55, %v477_v59  ;;  %v415_v10 = vld [vmem:[%s983_s14 + $0x50] sm:$0xff]  ;;  %v428_v11 = vld [vmem:[%s983_s14 + $0xb8] sm:$0xff]  ;;  %v455_v14 = vsel %vm437_vm1, %v414_v4, 0.0  ;;  %v486_v15 = vsel %vm437_vm1, %v427_v5, 0.0  ;;  %v429_v17 = vld [vmem:[%s983_s14 + $0xc0] sm:$0xff] }
  0x48   : > { %v416_v16 = vld [vmem:[%s983_s14 + $0x58] sm:$0xff]  ;;  %v457_v20 = vsel %vm437_vm1, %v415_v10, 0.0  ;;  %v488_v21 = vsel %vm437_vm1, %v428_v11, 0.0  ;;  %v417_v22 = vld [vmem:[%s983_s14 + $0x60] sm:$0xff]  ;;  %v430_v23 = vld [vmem:[%s983_s14 + $0xc8] sm:$0xff]  ;;  %v490_v27 = vsel %vm437_vm1, %v429_v17, 0.0 }
  0x49   : > { %v446_v58 = vadd.f32 %v445_v47, %v444_v51  ;;  %v481_v7 = vadd.f32 %v480_v61, %v479_v1  ;;  %v459_v26 = vsel %vm437_vm1, %v416_v16, 0.0  ;;  %v418_v28 = vld [vmem:[%s983_s14 + $0x68] sm:$0xff]  ;;  %v431_v29 = vld [vmem:[%s983_s14 + $0xd0] sm:$0xff]  ;;  %v461_v32 = vsel %vm437_vm1, %v417_v22, 0.0  ;;  %v432_v35 = vld [vmem:[%s983_s14 + $0xd8] sm:$0xff] }
  0x4a   : > { %v492_v33 = vsel %vm437_vm1, %v430_v23, 0.0  ;;  %v419_v34 = vld [vmem:[%s983_s14 + $0x70] sm:$0xff]  ;;  %v463_v38 = vsel %vm437_vm1, %v418_v28, 0.0  ;;  %v494_v39 = vsel %vm437_vm1, %v431_v29, 0.0  ;;  %v420_v40 = vld [vmem:[%s983_s14 + $0x78] sm:$0xff]  ;;  %v433_v41 = vld [vmem:[%s983_s14 + $0xe0] sm:$0xff] }
  0x4b   : > { %v448_v0 = vadd.f32 %v447_v53, %v446_v58  ;;  %v483_v13 = vadd.f32 %v482_v3, %v481_v7  ;;  %v465_v44 = vsel %vm437_vm1, %v419_v34, 0.0  ;;  %v496_v45 = vsel %vm437_vm1, %v432_v35, 0.0  ;;  %v434_v46 = vld [vmem:[%s983_s14 + $0xe8] sm:$0xff]  ;;  %v435_v51 = vld [vmem:[%s983_s14 + $0xf0] sm:$0xff]  ;;  %v436_v55 = vld [vmem:[%s983_s14 + $0xf8] sm:$0xff] }
  0x4c   : > { %v467_v49 = vsel %vm437_vm1, %v420_v40, 0.0  ;;  %v498_v50 = vsel %vm437_vm1, %v433_v41, 0.0  ;;  %v500_v54 = vsel %vm437_vm1, %v434_v46, 0.0  ;;  %v502_v58 = vsel %vm437_vm1, %v435_v51, 0.0  ;;  %v404_v10 = vld [vmem:[#allocation2] sm:$0x3] }
  0x4d   : > { %v450_v6 = vadd.f32 %v449_v60, %v448_v0  ;;  %v485_v19 = vadd.f32 %v484_v9, %v483_v13  ;;  %v504_v61 = vsel %vm437_vm1, %v436_v55, 0.0 }
  0x4f   : > { %v452_v12 = vadd.f32 %v451_v2, %v450_v6  ;;  %v487_v25 = vadd.f32 %v486_v15, %v485_v19 }
  0x51   : > { %v454_v18 = vadd.f32 %v453_v8, %v452_v12  ;;  %v489_v31 = vadd.f32 %v488_v21, %v487_v25 }
  0x53   : > { %v456_v24 = vadd.f32 %v455_v14, %v454_v18  ;;  %v491_v37 = vadd.f32 %v490_v27, %v489_v31 }
  0x55   : > { %v458_v30 = vadd.f32 %v457_v20, %v456_v24  ;;  %v493_v43 = vadd.f32 %v492_v33, %v491_v37 }
  0x57   : > { %v460_v36 = vadd.f32 %v459_v26, %v458_v30  ;;  %v495_v48 = vadd.f32 %v494_v39, %v493_v43 }
  0x59   : > { %v462_v42 = vadd.f32 %v461_v32, %v460_v36  ;;  %v497_v53 = vadd.f32 %v496_v45, %v495_v48 }
  0x5b   : > { %v464_v47 = vadd.f32 %v463_v38, %v462_v42  ;;  %v499_v57 = vadd.f32 %v498_v50, %v497_v53 }
  0x5d   : > { %v466_v52 = vadd.f32 %v465_v44, %v464_v47  ;;  %v501_v60 = vadd.f32 %v500_v54, %v499_v57 }
  0x5f   : > { %v468_v56 = vadd.f32 %v467_v49, %v466_v52  ;;  %v503_v63 = vadd.f32 %v502_v58, %v501_v60 }
  0x61   : > { %v469_v59 = vrot.slane %v468_v56, 4  ;;  %v505_v1 = vadd.f32 %v504_v61, %v503_v63 }
  0x63   : > { %v470_v62 = vadd.f32 %v469_v59, %v468_v56  ;;  %v506_v3 = vrot.slane %v505_v1, 4 }
  0x65   : > { %v471_v0 = vrot.slane %v470_v62, 2  ;;  %v507_v4 = vadd.f32 %v506_v3, %v505_v1 }
  0x67   : > { %v472_v2 = vadd.f32 %v471_v0, %v470_v62  ;;  %v508_v6 = vrot.slane %v507_v4, 2 }
  0x69   : > { %v473_v5 = vrot.slane %v472_v2, 1  ;;  %v509_v7 = vadd.f32 %v508_v6, %v507_v4 }
  0x6b   : > { %v474_v8 = vadd.f32 %v473_v5, %v472_v2  ;;  %v510_v9 = vrot.slane %v509_v7, 1 }
  0x6d   : > { %v511_v11 = vadd.f32 %v510_v9, %v509_v7 }
  0x6e   : > { %523 = sbr.rel (%p693_p9) target bundleno = 253 (0xfd), region = 86 }
  0x6f   : > { %v515_v12 = vsel %vm514_vm2, %v511_v11, %v474_v8 }
  0x70   : > { %v517_v13 = vadd.f32 %v515_v12, %v404_v10 }
  0x72   : > { %519 = vst.msk [vmem:[#allocation2] sm:$0x3] %vm518_vm3, %v517_v13 }
  0x73   : > { %v576_v14 = vld [vmem:[%s1109_s3 + $0x18] sm:$0xff]  ;;  %v575_v15 = vld [vmem:[%s1109_s3 + $0x10] sm:$0xff]  ;;  %v838_v17 = vmov 2.0   ;;  %v574_v18 = vld [vmem:[%s1109_s3 + $0x8] sm:$0xff] }
  0x74   : > { %596 = vmatpush.msra.mxu0 %v576_v14  ;;  %745 = vrcp.f32 %v838_v17  ;;  %v573_v20 = vld [vmem:[%s1109_s3] sm:$0xff] }
  0x75   : > { %v742_v52 = vld [vmem:[%s1107_s1] ss:$0 sm:$0xff] }
  0x76   : > { %597 = vmatpush.msra.mxu0 %v575_v15  ;;  %v743_v55 = vld [vmem:[%s1108_s2] ss:$0 sm:$0xff] }
  0x77   : > { %v744_v58 = vld [vmem:[%s1110_s4] ss:$0 sm:$0xff] }
  0x78   : > { %598 = vmatpush.msra.mxu0 %v574_v18 }
  0x79   : > { %v524_v16 = vld [vmem:[#allocation2] sm:$0x3] }
  0x7a   : > { %v525_v19 = vmul.f32 0.00390625, %v524_v16  ;;  %v746_v23 = vpop.eup %745  ;;  %599 = vmatpush.msra.mxu0 %v573_v20 }
  0x7b   : > { %v534_v25 = vmul.f32 2.0, %v746_v23  ;;  %vm538_vm4 = vweird.f32 %v746_v23 }
  0x7c   : > { %v526_v21 = vsel %vm518_vm3, %v525_v19, 0.0  ;;  %694 = vmatmul.msk.f32.vlgmr.msra.gmra.mxu0 %vm437_vm1, %v525_v19 }
  0x7d   : > { %v527_v22 = vrot.slane %v526_v21, 4  ;;  %v535_v27 = vsub.f32 1.0, %v534_v25 }
  0x7f   : > { %v528_v24 = vadd.f32 %v527_v22, %v526_v21  ;;  %v536_v29 = vmul.f32 %v746_v23, %v535_v27 }
  0x81   : > { %v529_v26 = vrot.slane %v528_v24, 2  ;;  %v537_v31 = vadd.f32 %v746_v23, %v536_v29 }
  0x83   : > { %v530_v28 = vadd.f32 %v529_v26, %v528_v24  ;;  %v539_v33 = vsel %vm538_vm4, %v746_v23, %v537_v31 }
  0x85   : > { %v531_v30 = vrot.slane %v530_v28, 1 }
  0x87   : > { %v532_v32 = vadd.f32 %v531_v30, %v530_v28 }
  0x89   : > { %v540_v34 = vmul.f32 %v539_v33, %v532_v32 }
  0x8b   : > { %v541_v35 = vsub.f32 %v525_v19, %v540_v34 }
  0x8d   : > { %v542_v36 = vmul.f32 %v541_v35, %v541_v35 }
  0x8f   : > { %v543_v37 = vsel %vm518_vm3, %v542_v36, 0.0 }
  0x90   : > { %v544_v38 = vrot.slane %v543_v37, 4 }
  0x92   : > { %v545_v39 = vadd.f32 %v544_v38, %v543_v37 }
  0x94   : > { %v546_v40 = vrot.slane %v545_v39, 2 }
  0x96   : > { %v547_v41 = vadd.f32 %v546_v40, %v545_v39 }
  0x98   : > { %v548_v42 = vrot.slane %v547_v41, 1 }
  0x9a   : > { %v549_v43 = vadd.f32 %v548_v42, %v547_v41 }
  0x9c   : > { %v550_v44 = vmul.f32 %v549_v43, %v539_v33 }
  0x9e   : > { %v551_v45 = vadd.f32 1e-05, %v550_v44 }
  0xa0   : > { %747 = vrsqrt.f32 %v551_v45  ;;  %vm558_vm5 = vweird.f32 %v551_v45 }
  0xa6   : > { %v748_v46 = vpop.eup %747 }
  0xa7   : > { %v553_v47 = vmul.f32 %v748_v46, %v551_v45  ;;  %vm559_vm6 = vweird.f32 %v748_v46 }
  0xa8   : > { %vm560_vm7 = vmor %vm558_vm5, %vm559_vm6 }
  0xa9   : > { %v554_v48 = vmul.f32 %v748_v46, %v553_v47 }
  0xab   : > { %v555_v49 = vmul.f32 0.5, %v554_v48 }
  0xad   : > { %v556_v50 = vsub.f32 1.5, %v555_v49 }
  0xaf   : > { %v557_v51 = vmul.f32 %v748_v46, %v556_v50 }
  0xb1   : > { %v561_v53 = vsel %vm560_vm7, %v748_v46, %v557_v51 }
  0xb2   : > { %v562_v54 = vmul.f32 %v561_v53, %v541_v35 }
  0xb4   : > { %v567_v56 = vmul.f32 %v742_v52, %v562_v54 }
  0xb6   : > { %v572_v57 = vadd.f32 %v743_v55, %v567_v56 }
  0xb8   : > { %605 = vst.msk [vmem:[#allocation6] sm:$0x3] %vm518_vm3, %v572_v57 }
  0xf9   : > { %v601_v59 = vpop.f32.mrf.mxu0 }
  0xfa   : > { %v602_v60 = vadd.f32 %v744_v58, %v601_v59 }
  0xfc   : > { %604 = vst [vmem:[#allocation4] sm:$0x3] %v602_v60 }
  0xfd PF: > { %p710_p10 = scmp.eq.s32.totalorder %s892_s24, 1  ;;  %s839_s9 = smov [#allocation4]  }
  0xfe   : > { %s612_s10 = sshll.u32 %s839_s9, 4  ;;  %s614_s13 = sshll.u32 %s1111_s5, 4  ;;  %s613_s10 = int_to_ptr.vmem [resolvable:$true] %s612_s10  ;;  %s615_s13 = int_to_ptr.hbm [resolvable:$true] %s614_s13 }
  0xff   : > { %703 = dma.vmem_to_hbm [thread:$0]  (%p710_p10), %s613_s10, 32, %s615_s13, [#allocation5]  }
 0x100   : > { %s626_s16 = sshll.u32 %s1112_s6, 4  ;;  %s840_s17 = smov [#allocation6]   ;;  %s627_s16 = int_to_ptr.hbm [resolvable:$true] %s626_s16 }
 0x101   : > { %s624_s18 = sshll.u32 %s840_s17, 4  ;;  %s625_s18 = int_to_ptr.vmem [resolvable:$true] %s624_s18 }
 0x102   : > { %705 = dma.vmem_to_hbm [thread:$0]  (%p710_p10), %s625_s18, 32, %s627_s16, [#allocation7]  }
 0x103   : > { %818 = dma.done.wait (%p710_p10), [#allocation5], 32  }
 0x104   : > { %820 = vsyncadd (%p710_p10), [#allocation5], 4294967264 }
 0x105   : > { %822 = dma.done.wait (%p710_p10), [#allocation7], 32  }
 0x106   : > { %824 = vsyncadd (%p710_p10), [#allocation7], 4294967264 }
 0x107 PF: > { %p16_p11 = scmp.ge.s32.totalorder %s895_s25, 4   ;;  %s1113_s21 = smov %s831_s22 }
 0x108   : > { %s1114_s22 = smov %s904_s28  ;;  %s1115_s23 = smov %s895_s25 }
 0x109   :  { %18 = sbr.rel (!%p16_p11) target bundleno = 3 (0x3), region = 126 }
 0x10e   :  { %645 = vsyncpa [#allocation5], 1 }
 0x10f   :  { %647 = vsyncpa [#allocation5 + $0x1], 1 }
 0x110   :  { %648 = vsyncpa [#allocation7], 1 }

</bundles_post_ra>
